<compile_context>
chip_gen: v7x
topology: tpu7x:2x2x1
jax: 0.10.0
libtpu: 0.0.40
codegen_flags: <defaults>
</compile_context>

<pallas_src>
import numpy as np
import jax
import jax.numpy as jnp
from jax.experimental import pallas as pl
from jax.experimental.pallas import tpu as pltpu


def _round_up(x, m):
    return ((x + m - 1) // m) * m


# ----------------------------------------------------------------------------
# Pallas kernel: out^T = X^T @ P^T   (lane-dense output, divisor folded into P)
# ----------------------------------------------------------------------------
def _gpool_pallas(Xt, Pt, tL):
    """Xt: (L_pad, N_pad) f32, Pt: (N_pad, D_pad) f32 -> (L_pad, D_pad) f32."""
    Lp, Np = Xt.shape
    Np2, Dp = Pt.shape
    assert Np2 == Np and Lp % tL == 0
    grid_l = Lp // tL

    def kernel(x_ref, p_ref, o_ref):
        # Single MXU call per grid step; f32 accumulate, f32 store, 128 lanes.
        o_ref[...] = jnp.dot(x_ref[...], p_ref[...],
                             preferred_element_type=jnp.float32)

    return pl.pallas_call(
        kernel,
        out_shape=jax.ShapeDtypeStruct((Lp, Dp), jnp.float32),
        grid_spec=pltpu.PrefetchScalarGridSpec(
            num_scalar_prefetch=0,
            grid=(grid_l,),
            in_specs=[
                # X^T tiled along L ("parallel" -> v7x cores get disjoint L rows)
                pl.BlockSpec((tL, Np), lambda i: (i, 0)),
                # P^T resident across the whole grid (constant block index)
                pl.BlockSpec((Np, Dp), lambda i: (0, 0)),
            ],
            out_specs=pl.BlockSpec((tL, Dp), lambda i: (i, 0)),
        ),
        compiler_params=pltpu.CompilerParams(
            dimension_semantics=("parallel",)),
        cost_estimate=pl.CostEstimate(
            flops=2 * Lp * Np * Dp,
            transcendentals=0,
            bytes_accessed=4 * (Lp * Np + Np * Dp + Lp * Dp)),
    )(Xt, Pt)


def _choose_l_tile(L):
    """Pick the L tile: one grid step for small L, 512-row tiles for large L."""
    if L <= 512:
        tL = max(_round_up(L, 8), 8)
        return tL, tL            # (tile, padded L) -> grid=(1,)
    tL = 512
    return tL, _round_up(L, tL)


# ----------------------------------------------------------------------------
# Synthetic (deterministic) replacements for the .npy-backed module state
# ----------------------------------------------------------------------------
def _edge_build_synthetic(batch_num, down_nodes_num):
    # TODO(synk): real edge_index/edge_attr come from precomputed icosphere edge
    # files ('./edge/*.npy'); a deterministic undirected ring graph (no self
    # loops, coalesced) is synthesized instead.  Pure host-side bookkeeping.
    src = np.arange(down_nodes_num)
    dst = (src + 1) % down_nodes_num
    ei = np.stack([np.concatenate([src, dst]), np.concatenate([dst, src])])
    order = np.lexsort((ei[1], ei[0]))
    ei = ei[:, order]
    all_ei = np.hstack([ei + i * down_nodes_num for i in range(batch_num)])
    all_ea = np.ones((all_ei.shape[1], 1), np.float32)
    return jnp.asarray(all_ei, jnp.int32), jnp.asarray(all_ea)


class StandardGPoolPallas:
    """JAX/Pallas port of net/TSL.py::Standard_GPool (pooling_type='mean')."""

    def __init__(self, pooling_type="mean", ex_nodes=324, num_neighbors=7, seed=0):
        assert pooling_type == "mean"
        N, K = int(ex_nodes), int(num_neighbors)
        D = (N + 12) // 4
        gap1, gap2, gap3 = D // 2, N // 2, N // 2 + D // 2
        self.N, self.K, self.D = N, K, D
        self.gap1, self.gap2, self.gap3 = gap1, gap2, gap3

        # TODO(synk): real adjacency comes from 'adj_edge_1ring_*.npy'; a
        # deterministic synthetic 1-ring table with the same structure is used:
        # self index first, then K-1 neighbors; the 12 "pentagon" nodes at the
        # start of each gathered region point their last neighbor at the
        # zero-pad row (index N).
        rng = np.random.default_rng(seed)
        adj = rng.integers(0, N, size=(N, K - 1)).astype(np.int64)
        adj[0:12, -1] = N
        adj[gap2:gap2 + 12, -1] = N
        neigh = np.zeros((N, K), np.int64)
        neigh[:, 0] = np.arange(N)
        neigh[:, 1:] = adj
        self.neigh_orders = neigh.ravel()

        # Fold static gather + neighbor-sum + per-row divisor into one matrix.
        idx = np.concatenate([
            self.neigh_orders[0:gap1 * K],
            self.neigh_orders[gap2 * K:gap3 * K],
        ]).reshape(D, K)
        P = np.zeros((D, N + 1), np.float32)
        np.add.at(P, (np.repeat(np.arange(D), K), idx.ravel()), 1.0)
        P = P[:, :N]                       # drop zero-pad column (pad row == 0)
        div = np.full((D, 1), float(K), np.float32)
        div[0:12] = float(K - 1)           # pentagon rows: mean over K-1
        div[gap1:gap1 + 12] = float(K - 1)
        P = P / div                        # fold divisor -> kernel is bare matmul

        # Store P^T padded to (N_pad, D_pad):
        #   D_pad = 128 -> output last dim is a full lane vreg (no masked stores)
        #   N_pad = 384 -> 3 clean 128-wide K tiles on the MXU (padding is zero,
        #                  so the extra MACs contribute exactly nothing).
        self.D_pad = _round_up(D, 128)
        self.N_pad = _round_up(N, 128)
        Pt = np.zeros((self.N_pad, self.D_pad), np.float32)
        Pt[:N, :D] = P.T
        self.Pt = jnp.asarray(Pt)

    def __call__(self, x, batch_num):
        F = x.shape[-1]
        B, N, D = batch_num, self.N, self.D
        L = B * F

        # (B*N, F) -> X^T (L, N): node index on the contraction (lane) axis,
        # batch*feature on the sublane axis.  Pad to (L_pad, N_pad) with zeros.
        xs = jnp.transpose(x.reshape(B, N, F), (0, 2, 1)).reshape(L, N)
        xs = xs.astype(jnp.float32)
        tL, L_pad = _choose_l_tile(L)
        Xt = jnp.zeros((L_pad, self.N_pad), jnp.float32)
        Xt = jax.lax.dynamic_update_slice(Xt, xs, (0, 0))

        outT = _gpool_pallas(Xt, self.Pt, tL)                  # (L_pad, D_pad)
        outT = outT[:L, :D]                                    # (B*F, D)
        pooled = jnp.transpose(outT.reshape(B, F, D), (0, 2, 1))
        pooled = pooled.reshape(-1, F).astype(x.dtype)         # (B*D, F)

        edge_index, edge_attr = _edge_build_synthetic(B, D)
        return pooled, edge_index, edge_attr


# ----------------------------------------------------------------------------
# Pure-JAX reference (direct transcription of the PyTorch forward)
# ----------------------------------------------------------------------------
def _ref_forward(x, batch_num, neigh_orders, N, K, D, gap1, gap2, gap3):
    F = x.shape[-1]
    xb = x.reshape(batch_num, N, F)
    xb = jnp.concatenate([xb, jnp.zeros((batch_num, 1, F), x.dtype)], axis=1)
    x1 = xb[:, neigh_orders[0:gap1 * K], :]
    x2 = xb[:, neigh_orders[gap2 * K:gap3 * K], :]
    g = jnp.concatenate([x1, x2], axis=1).reshape(batch_num, D, K, F)
    m = jnp.mean(g, axis=2)
    l1 = jnp.sum(g[:, 0:12], axis=2) / (K - 1)
    l2 = jnp.sum(g[:, gap1:gap1 + 12], axis=2) / (K - 1)
    m = m.at[:, 0:12].set(l1).at[:, gap1:gap1 + 12].set(l2)
    return m.reshape(-1, F)


if __name__ == "__main__":
    B, N, F = 2, 324, 32   # nodes_num=324 -> down_nodes_num=84, K=7
    mod = StandardGPoolPallas(pooling_type="mean", ex_nodes=N, num_neighbors=7)

    key = jax.random.PRNGKey(0)
    x = jax.random.normal(key, (B * N, F), dtype=jnp.float32)

    out, edge_index, edge_attr = mod(x, B)
    out = jax.block_until_ready(out)

    assert out.shape == (B * mod.D, F)
    ref = _ref_forward(x, B, jnp.asarray(mod.neigh_orders), N, mod.K, mod.D,
                       mod.gap1, mod.gap2, mod.gap3)
    np.testing.assert_allclose(np.asarray(out), np.asarray(ref),
                               rtol=1e-5, atol=1e-5)
    print("KERNEL_OK")
</pallas_src>

<mosaic_0001>
module attributes {stable_mosaic.version = 11 : i64} {
  func.func @kernel(%arg0: i32, %arg1: memref<64x384xf32, #tpu.memory_space<vmem>>, %arg2: memref<384x128xf32, #tpu.memory_space<vmem>>, %arg3: memref<64x128xf32, #tpu.memory_space<vmem>>) attributes {dimension_semantics = [#tpu.dimension_semantics<parallel>], iteration_bounds = array<i64: 1>, scalar_prefetch = 0 : i64, scratch_operands = 0 : i64, tpu.core_type = #tpu.core_type<tc>, window_params = [{transform_indices = @transform_0, window_bounds = array<i64: 64, 384>}, {pipeline_mode = #tpu.pipeline_mode<synchronous>, transform_indices = @transform_1, window_bounds = array<i64: 384, 128>}, {transform_indices = @transform_2, window_bounds = array<i64: 64, 128>}]} {
    %c0 = arith.constant 0 : index
    %c0_0 = arith.constant 0 : index
    %0 = vector.load %arg1[%c0, %c0_0] : memref<64x384xf32, #tpu.memory_space<vmem>>, vector<64x384xf32>
    %c0_1 = arith.constant 0 : index
    %c0_2 = arith.constant 0 : index
    %1 = vector.load %arg2[%c0_1, %c0_2] : memref<384x128xf32, #tpu.memory_space<vmem>>, vector<384x128xf32>
    %cst = arith.constant dense<0.000000e+00> : vector<64x128xf32>
    %2 = tpu.matmul %0, %1, %cst {dimension_numbers = #tpu.dot_dimension_numbers<[1], [0], [0], [1], [0, 0, 1, 1], [], []>} : vector<64x384xf32>, vector<384x128xf32>, vector<64x128xf32> -> vector<64x128xf32>
    %c0_3 = arith.constant 0 : index
    %c0_4 = arith.constant 0 : index
    %3 = vector.load %arg3[%c0_3, %c0_4] : memref<64x128xf32, #tpu.memory_space<vmem>>, vector<64x128xf32>
    tpu.vector_store %arg3[%c0_3, %c0_4], %2 {strides = array<i32>} : memref<64x128xf32, #tpu.memory_space<vmem>>, vector<64x128xf32>,
    return
  }
  func.func @transform_0(%arg0: i32) -> (i32, i32) {
    %c0_i32 = arith.constant 0 : i32
    %c0_i32_0 = arith.constant 0 : i32
    return %arg0, %c0_i32 : i32, i32
  }
  func.func @transform_1(%arg0: i32) -> (i32, i32) {
    %c0_i32 = arith.constant 0 : i32
    %c0_i32_0 = arith.constant 0 : i32
    %c0_i32_1 = arith.constant 0 : i32
    return %c0_i32, %c0_i32_0 : i32, i32
  }
  func.func @transform_2(%arg0: i32) -> (i32, i32) {
    %c0_i32 = arith.constant 0 : i32
    %c0_i32_0 = arith.constant 0 : i32
    return %arg0, %c0_i32 : i32, i32
  }
}

</mosaic_0001>

<bundles_post_ra>
// kernel: tpu_custom_call.1
= control target key start
LH: loop header
LB: loop body
LE: loop exit
PB: predicated region body
PF: predicated region fallthrough
CT: control target
= control target key end

     0   :  { %7 = vsyncpa [#allocation3], 0  ;;  %s679_s0 = inlined_call_operand.hbm [shape: f32[64,384], index: 0, kind: input, shape index: {}]   ;;  %s680_s1 = inlined_call_operand.hbm [shape: f32[384,128], index: 1, kind: input, shape index: {}]   ;;  %s681_s2 = inlined_call_operand.hbm [shape: f32[64,128], index: 2, kind: output, shape index: {}]  }
   0x1   :  { %8 = vsyncpa [#allocation6], 0 }
   0x2   :  { %9 = vsyncpa [#allocation4], 0  ;;  %s615_s9 = smov [#allocation2]   ;;  %s543_s13 = scalar_lea.hbm %s679_s0, 3072 }
   0x3   :  { %s15_s10 = sshll.u32 %s615_s9, 4  ;;  %p544_p0 = scmp.ne.s32.totalorder %s679_s0, %s543_s13  ;;  %s16_s10 = int_to_ptr.vmem [resolvable:$true] %s15_s10 }
   0x4   :  { %p547_p1 = scmp.lt.u32.totalorder %s543_s13, %s679_s0 }
   0x6   :  { %p549_p2 = pnand %p547_p1, %p544_p0 }
   0x8   :  { %552 = shalt.err (!%p549_p2)
}
   0x9   :  { %s553_s18 = scalar_lea.vmem %s16_s10, 3072  ;;  %p558_p4 = scmp.lt.s32.totalorder %s16_s10, %s16_s10 }
   0xa   :  { %p554_p3 = scmp.ne.s32.totalorder %s16_s10, %s553_s18  ;;  %p559_p5 = scmp.lt.s32.totalorder %s553_s18, %s553_s18 }
   0xc   :  { %p560_p6 = por %p559_p5, %p558_p4 }
   0xe   :  { %p561_p7 = pnand %p560_p6, %p554_p3 }
  0x10   :  { %564 = shalt.err (!%p561_p7)
}
  0x11   :  { %s616_s19 = smov 384   ;;  %s617_s20 = smov 24  }
  0x12   :  { %21 = dma.hbm_to_vmem [thread:$0]  %s679_s0, 3072, %s16_s10, [#allocation3], %s616_s19, %s616_s19, %s617_s20  }
  0x13   :  { %s618_s23 = smov [#allocation5]   ;;  %s565_s27 = scalar_lea.hbm %s680_s1, 6144 }
  0x14   :  { %s27_s24 = sshll.u32 %s618_s23, 4  ;;  %p566_p8 = scmp.ne.s32.totalorder %s680_s1, %s565_s27  ;;  %s28_s24 = int_to_ptr.vmem [resolvable:$true] %s27_s24 }
  0x15   :  { %p569_p9 = scmp.lt.u32.totalorder %s565_s27, %s680_s1 }
  0x17   :  { %p571_p10 = pnand %p569_p9, %p566_p8 }
  0x19   :  { %574 = shalt.err (!%p571_p10)
}
  0x1a   :  { %s575_s4 = scalar_lea.vmem %s28_s24, 6144  ;;  %p580_p12 = scmp.lt.s32.totalorder %s28_s24, %s28_s24 }
  0x1b   :  { %p576_p11 = scmp.ne.s32.totalorder %s28_s24, %s575_s4  ;;  %p581_p13 = scmp.lt.s32.totalorder %s575_s4, %s575_s4 }
  0x1d   :  { %p582_p0 = por %p581_p13, %p580_p12 }
  0x1f   :  { %p583_p1 = pnand %p582_p0, %p576_p11 }
  0x21   :  { %586 = shalt.err (!%p583_p1)
}
  0x22   :  { %s619_s0 = smov 128   ;;  %s620_s5 = smov 8  }
  0x23   :  { %33 = dma.hbm_to_vmem [thread:$0]  %s680_s1, 6144, %s28_s24, [#allocation6], %s619_s0, %s619_s0, %s620_s5  }
  0x24   :  { %609 = dma.done.wait [#allocation3], 3072  }
  0x25   :  { %610 = vsyncadd [#allocation3], 4294964224 }
  0x26   :  { %611 = dma.done.wait [#allocation6], 6144  }
  0x27   :  { %612 = vsyncadd [#allocation6], 4294961152  ;;  %v80_v0 = vld [vmem:[#allocation5 + $0x80] sm:$0xff]  ;;  %v81_v1 = vld [vmem:[#allocation5 + $0x88] sm:$0xff]  ;;  %s621_s1 = smov [#allocation7]  }
  0x28   :  { %v64_v2 = vld [vmem:[#allocation5] sm:$0xff]  ;;  %v472_v3 = vpack.c.bf16 %v81_v1, %v80_v0  ;;  %v65_v4 = vld [vmem:[#allocation5 + $0x8] sm:$0xff]  ;;  %v82_v9 = vld [vmem:[#allocation5 + $0x90] sm:$0xff]  ;;  %s335_s8 = sshll.u32 %s621_s1, 4  ;;  %s336_s8 = int_to_ptr.vmem [resolvable:$true] %s335_s8 }
  0x29   :  { %v96_v5 = vld [vmem:[#allocation5 + $0x100] sm:$0xff]  ;;  %v97_v6 = vld [vmem:[#allocation5 + $0x108] sm:$0xff]  ;;  %v474_v7 = vpack.c.bf16 %v65_v4, %v64_v2  ;;  %v83_v10 = vld [vmem:[#allocation5 + $0x98] sm:$0xff]  ;;  %s587_s9 = scalar_lea.vmem %s336_s8, 1024  ;;  %p592_p3 = scmp.lt.s32.totalorder %s336_s8, %s336_s8 }
  0x2a   :  { %v504_v8 = vpack.c.bf16 %v97_v6, %v96_v5  ;;  %v66_v11 = vld [vmem:[#allocation5 + $0x10] sm:$0xff]  ;;  %473 = vmatprep.subr.bf16.mxu0 %v472_v3  ;;  %v476_v12 = vpack.c.bf16 %v83_v10, %v82_v9  ;;  %v67_v13 = vld [vmem:[#allocation5 + $0x18] sm:$0xff]  ;;  %v84_v18 = vld [vmem:[#allocation5 + $0xa0] sm:$0xff]  ;;  %p588_p2 = scmp.ne.s32.totalorder %s336_s8, %s587_s9  ;;  %p593_p4 = scmp.lt.s32.totalorder %s587_s9, %s587_s9 }
  0x2b   :  { %v98_v14 = vld [vmem:[#allocation5 + $0x110] sm:$0xff]  ;;  %v99_v15 = vld [vmem:[#allocation5 + $0x118] sm:$0xff]  ;;  %475 = vmatpush3.bf16.msra.mxu0 %v474_v7  ;;  %v478_v16 = vpack.c.bf16 %v67_v13, %v66_v11  ;;  %v85_v19 = vld [vmem:[#allocation5 + $0xa8] sm:$0xff] }
  0x2c   :  { %505 = vmatprep.subr.bf16.mxu1 %v504_v8  ;;  %v508_v17 = vpack.c.bf16 %v99_v15, %v98_v14  ;;  %v68_v20 = vld [vmem:[#allocation5 + $0x20] sm:$0xff]  ;;  %477 = vmatprep.subr.bf16.mxu0 %v476_v12  ;;  %v480_v21 = vpack.c.bf16 %v85_v19, %v84_v18  ;;  %v69_v22 = vld [vmem:[#allocation5 + $0x28] sm:$0xff]  ;;  %v86_v26 = vld [vmem:[#allocation5 + $0xb0] sm:$0xff]  ;;  %p594_p5 = por %p593_p4, %p592_p3 }
  0x2d   :  { %507 = vmatpush3.bf16.msra.mxu1 %v504_v8  ;;  %v100_v23 = vld [vmem:[#allocation5 + $0x120] sm:$0xff]  ;;  %v101_v24 = vld [vmem:[#allocation5 + $0x128] sm:$0xff]  ;;  %v87_v27 = vld [vmem:[#allocation5 + $0xb8] sm:$0xff]  ;;  %v482_v30 = vpack.c.bf16 %v69_v22, %v68_v20 }
  0x2e   :  { %509 = vmatprep.subr.bf16.mxu1 %v508_v17  ;;  %v512_v25 = vpack.c.bf16 %v101_v24, %v100_v23  ;;  %v102_v28 = vld [vmem:[#allocation5 + $0x130] sm:$0xff]  ;;  %v103_v29 = vld [vmem:[#allocation5 + $0x138] sm:$0xff]  ;;  %v484_v31 = vpack.c.bf16 %v87_v27, %v86_v26  ;;  %v88_v35 = vld [vmem:[#allocation5 + $0xc0] sm:$0xff]  ;;  %p595_p6 = pnand %p594_p5, %p588_p2 }
  0x2f   :  { %479 = vmatpush3.bf16.msra.mxu0 %v478_v16  ;;  %v70_v32 = vld [vmem:[#allocation5 + $0x30] sm:$0xff]  ;;  %v71_v33 = vld [vmem:[#allocation5 + $0x38] sm:$0xff]  ;;  %v516_v34 = vpack.c.bf16 %v103_v29, %v102_v28  ;;  %v89_v36 = vld [vmem:[#allocation5 + $0xc8] sm:$0xff] }
  0x30   :  { %481 = vmatprep.subr.bf16.mxu0 %v480_v21  ;;  %v104_v37 = vld [vmem:[#allocation5 + $0x140] sm:$0xff]  ;;  %v105_v38 = vld [vmem:[#allocation5 + $0x148] sm:$0xff]  ;;  %v486_v39 = vpack.c.bf16 %v71_v33, %v70_v32  ;;  %v488_v40 = vpack.c.bf16 %v89_v36, %v88_v35  ;;  %v90_v44 = vld [vmem:[#allocation5 + $0xd0] sm:$0xff] }
  0x31   :  { %511 = vmatpush3.bf16.msra.mxu1 %v508_v17  ;;  %v72_v41 = vld [vmem:[#allocation5 + $0x40] sm:$0xff]  ;;  %v73_v42 = vld [vmem:[#allocation5 + $0x48] sm:$0xff]  ;;  %v520_v43 = vpack.c.bf16 %v105_v38, %v104_v37  ;;  %v91_v45 = vld [vmem:[#allocation5 + $0xd8] sm:$0xff] }
  0x32   :  { %513 = vmatprep.subr.bf16.mxu1 %v512_v25  ;;  %v106_v46 = vld [vmem:[#allocation5 + $0x150] sm:$0xff]  ;;  %v107_v47 = vld [vmem:[#allocation5 + $0x158] sm:$0xff]  ;;  %v490_v48 = vpack.c.bf16 %v73_v42, %v72_v41  ;;  %v41_v49 = vld [vmem:[#allocation2 + $0x8] sm:$0xff]  ;;  %v492_v51 = vpack.c.bf16 %v91_v45, %v90_v44 }
  0x33   :  { %483 = vmatpush3.bf16.msra.mxu0 %v482_v30  ;;  %v42_v50 = vld [vmem:[#allocation2 + $0x10] sm:$0xff]  ;;  %v75_v53 = vld [vmem:[#allocation5 + $0x58] sm:$0xff]  ;;  %v524_v54 = vpack.c.bf16 %v107_v47, %v106_v46  ;;  %v92_v55 = vld [vmem:[#allocation5 + $0xe0] sm:$0xff]  ;;  %176 = vmatprep.mubr.f32.mxu0 %v41_v49 }
  0x34   :  { %485 = vmatprep.subr.bf16.mxu0 %v484_v31  ;;  %v74_v52 = vld [vmem:[#allocation5 + $0x50] sm:$0xff]  ;;  %v93_v56 = vld [vmem:[#allocation5 + $0xe8] sm:$0xff]  ;;  %v108_v57 = vld [vmem:[#allocation5 + $0x160] sm:$0xff]  ;;  %460 = vmatprep.mubr.f32.mxu1 %v42_v50 }
  0x35   :  { %515 = vmatpush3.bf16.msra.mxu1 %v512_v25  ;;  %v109_v58 = vld [vmem:[#allocation5 + $0x168] sm:$0xff]  ;;  %v494_v59 = vpack.c.bf16 %v75_v53, %v74_v52  ;;  %v496_v60 = vpack.c.bf16 %v93_v56, %v92_v55  ;;  %v76_v61 = vld [vmem:[#allocation5 + $0x60] sm:$0xff]  ;;  %v94_v0 = vld [vmem:[#allocation5 + $0xf0] sm:$0xff] }
  0x36   :  { %517 = vmatprep.subr.bf16.mxu1 %v516_v34  ;;  %v77_v62 = vld [vmem:[#allocation5 + $0x68] sm:$0xff]  ;;  %v528_v63 = vpack.c.bf16 %v109_v58, %v108_v57  ;;  %v95_v1 = vld [vmem:[#allocation5 + $0xf8] sm:$0xff]  ;;  %v110_v2 = vld [vmem:[#allocation5 + $0x170] sm:$0xff] }
  0x37   :  { %487 = vmatpush3.bf16.msra.mxu0 %v486_v39  ;;  %v111_v3 = vld [vmem:[#allocation5 + $0x178] sm:$0xff]  ;;  %v498_v4 = vpack.c.bf16 %v77_v62, %v76_v61  ;;  %v500_v5 = vpack.c.bf16 %v95_v1, %v94_v0  ;;  %v78_v6 = vld [vmem:[#allocation5 + $0x70] sm:$0xff]  ;;  %v40_v10 = vld [vmem:[#allocation2] sm:$0xff] }
  0x38   :  { %489 = vmatprep.subr.bf16.mxu0 %v488_v40  ;;  %v79_v7 = vld [vmem:[#allocation5 + $0x78] sm:$0xff]  ;;  %v532_v8 = vpack.c.bf16 %v111_v3, %v110_v2  ;;  %v45_v11 = vld [vmem:[#allocation2 + $0x28] sm:$0xff]  ;;  %v44_v12 = vld [vmem:[#allocation2 + $0x20] sm:$0xff] }
  0x39   :  { %519 = vmatpush3.bf16.msra.mxu1 %v516_v34  ;;  %v502_v9 = vpack.c.bf16 %v79_v7, %v78_v6  ;;  %v48_v13 = vld [vmem:[#allocation2 + $0x40] sm:$0xff]  ;;  %v43_v14 = vld [vmem:[#allocation2 + $0x18] sm:$0xff]  ;;  %v54_v17 = vld [vmem:[#allocation2 + $0x70] sm:$0xff] }
  0x3a   :  { %521 = vmatprep.subr.bf16.mxu1 %v520_v43  ;;  %v47_v15 = vld [vmem:[#allocation2 + $0x38] sm:$0xff]  ;;  %v46_v18 = vld [vmem:[#allocation2 + $0x30] sm:$0xff]  ;;  %v57_v20 = vld [vmem:[#allocation2 + $0x88] sm:$0xff] }
  0x3b   :  { %491 = vmatpush3.bf16.msra.mxu0 %v490_v48  ;;  %v51_v16 = vld [vmem:[#allocation2 + $0x58] sm:$0xff]  ;;  %v50_v19 = vld [vmem:[#allocation2 + $0x50] sm:$0xff]  ;;  %v60_v21 = vld [vmem:[#allocation2 + $0xa0] sm:$0xff] }
  0x3c   :  { %493 = vmatprep.subr.bf16.mxu0 %v492_v51  ;;  %v49_v22 = vld [vmem:[#allocation2 + $0x48] sm:$0xff]  ;;  %v63_v24 = vld [vmem:[#allocation2 + $0xb8] sm:$0xff]  ;;  %v52_v25 = vld [vmem:[#allocation2 + $0x60] sm:$0xff] }
  0x3d   :  { %523 = vmatpush3.bf16.msra.mxu1 %v520_v43  ;;  %v53_v23 = vld [vmem:[#allocation2 + $0x68] sm:$0xff]  ;;  %v56_v26 = vld [vmem:[#allocation2 + $0x80] sm:$0xff]  ;;  %v55_v27 = vld [vmem:[#allocation2 + $0x78] sm:$0xff] }
  0x3e   :  { %525 = vmatprep.subr.bf16.mxu1 %v524_v54  ;;  %v59_v28 = vld [vmem:[#allocation2 + $0x98] sm:$0xff]  ;;  %v58_v29 = vld [vmem:[#allocation2 + $0x90] sm:$0xff]  ;;  %v61_v31 = vld [vmem:[#allocation2 + $0xa8] sm:$0xff] }
  0x3f   :  { %495 = vmatpush3.bf16.msra.mxu0 %v494_v59  ;;  %v62_v30 = vld [vmem:[#allocation2 + $0xb0] sm:$0xff] }
  0x40   :  { %497 = vmatprep.subr.bf16.mxu0 %v496_v60 }
  0x41   :  { %527 = vmatpush3.bf16.msra.mxu1 %v524_v54 }
  0x42   :  { %529 = vmatprep.subr.bf16.mxu1 %v528_v63 }
  0x43   :  { %499 = vmatpush3.bf16.msra.mxu0 %v498_v4 }
  0x44   :  { %501 = vmatprep.subr.bf16.mxu0 %v500_v5 }
  0x45   :  { %531 = vmatpush3.bf16.msra.mxu1 %v528_v63 }
  0x46   :  { %533 = vmatprep.subr.bf16.mxu1 %v532_v8 }
  0x47   :  { %503 = vmatpush3.bf16.msra.mxu0 %v502_v9 }
  0x49   :  { %535 = vmatpush3.bf16.msra.mxu1 %v532_v8 }
  0x4a   :  { %177 = vmatmul.mubr.f32.vlgmr.msra.gmra.mrb[0].mxu0 %v40_v10 }
  0x4b   :  { %181 = vmatprep.mubr.f32.mxu0 %v44_v12 }
  0x4c   :  { %461 = vmatmul.mubr.f32.vlgmr.msra.gmra.mrb[0].mxu1 %v45_v11 }
  0x4d   :  { %463 = vmatprep.mubr.f32.mxu1 %v48_v13 }
  0x4e   :  { %182 = vmatmul.mubr.f32.gmra.mrb[2].mxu0 %v43_v14 }
  0x4f   :  { %186 = vmatprep.mubr.f32.mxu0 %v47_v15 }
  0x50   :  { %464 = vmatmul.mubr.f32.gmra.mrb[2].mxu1 %v51_v16 }
  0x51   :  { %466 = vmatprep.mubr.f32.mxu1 %v54_v17 }
  0x52   :  { %187 = vmatmul.mubr.f32.gmra.mrb[4].mxu0 %v46_v18 }
  0x53   :  { %191 = vmatprep.mubr.f32.mxu0 %v50_v19 }
  0x54   :  { %467 = vmatmul.mubr.f32.gmra.mrb[4].mxu1 %v57_v20 }
  0x55   :  { %469 = vmatprep.mubr.f32.mxu1 %v60_v21 }
  0x56   :  { %192 = vmatmul.mubr.f32.gmra.mrb[6].mxu0 %v49_v22 }
  0x57   :  { %196 = vmatprep.mubr.f32.mxu0 %v53_v23 }
  0x58   :  { %470 = vmatmul.mubr.f32.gmra.mrb[6].mxu1 %v63_v24 }
  0x5a   :  { %197 = vmatmul.mubr.f32.gmra.mrb[8].mxu0 %v52_v25 }
  0x5b   :  { %201 = vmatprep.mubr.f32.mxu0 %v56_v26 }
  0x5e   :  { %202 = vmatmul.mubr.f32.gmra.mrb[10].mxu0 %v55_v27 }
  0x5f   :  { %206 = vmatprep.mubr.f32.mxu0 %v59_v28 }
  0x62   :  { %207 = vmatmul.mubr.f32.gmra.mrb[12].mxu0 %v58_v29 }
  0x63   :  { %211 = vmatprep.mubr.f32.mxu0 %v62_v30 }
  0x66   :  { %212 = vmatmul.mubr.f32.gmra.mrb[14].mxu0 %v61_v31 }
 0x11d   :  { %v380_v32 = vpop.f32.mrb[0].mxu0 }
 0x11e   :  { %v381_v33 = vpop.f32.mrb[1].mxu0 }
 0x11f   :  { %v462_v34 = vpop.f32.mrb[0].mxu1  ;;  %v382_v35 = vadd.f32 %v381_v33, %v380_v32 }
 0x120   :  { %v283_v36 = vpop.f32.mrb[1].mxu1 }
 0x121   :  { %v284_v37 = vadd.f32 %v382_v35, %v283_v36  ;;  %v383_v38 = vpop.f32.mrb[2].mxu0 }
 0x122   :  { %v384_v39 = vpop.f32.mrb[3].mxu0 }
 0x123   :  { %v465_v40 = vpop.f32.mrb[2].mxu1  ;;  %322 = vst [vmem:[#allocation7] sm:$0xff] %v284_v37  ;;  %v385_v41 = vadd.f32 %v384_v39, %v383_v38 }
 0x124   :  { %v293_v42 = vpop.f32.mrb[3].mxu1 }
 0x125   :  { %v289_v43 = vadd.f32 %v462_v34, %v385_v41  ;;  %v386_v44 = vpop.f32.mrb[4].mxu0 }
 0x126   :  { %v387_v45 = vpop.f32.mrb[5].mxu0 }
 0x127   :  { %v468_v46 = vpop.f32.mrb[4].mxu1  ;;  %323 = vst [vmem:[#allocation7 + $0x8] sm:$0xff] %v289_v43  ;;  %v388_v47 = vadd.f32 %v387_v45, %v386_v44 }
 0x128   :  { %v303_v48 = vpop.f32.mrb[5].mxu1 }
 0x129   :  { %v294_v49 = vadd.f32 %v388_v47, %v293_v42  ;;  %v389_v50 = vpop.f32.mrb[6].mxu0 }
 0x12a   :  { %v390_v51 = vpop.f32.mrb[7].mxu0 }
 0x12b   :  { %v471_v52 = vpop.f32.mrb[6].mxu1  ;;  %324 = vst [vmem:[#allocation7 + $0x10] sm:$0xff] %v294_v49  ;;  %v391_v53 = vadd.f32 %v390_v51, %v389_v50 }
 0x12c   :  { %v313_v54 = vpop.f32.mrb[7].mxu1 }
 0x12d   :  { %v299_v55 = vadd.f32 %v465_v40, %v391_v53  ;;  %v392_v56 = vpop.f32.mrb[8].mxu0 }
 0x12e   :  { %v393_v57 = vpop.f32.mrb[9].mxu0 }
 0x12f   :  { %325 = vst [vmem:[#allocation7 + $0x18] sm:$0xff] %v299_v55  ;;  %v394_v58 = vadd.f32 %v393_v57, %v392_v56 }
 0x131   :  { %v304_v59 = vadd.f32 %v394_v58, %v303_v48  ;;  %v395_v60 = vpop.f32.mrb[10].mxu0 }
 0x132   :  { %v396_v61 = vpop.f32.mrb[11].mxu0 }
 0x133   :  { %326 = vst [vmem:[#allocation7 + $0x20] sm:$0xff] %v304_v59  ;;  %v397_v62 = vadd.f32 %v396_v61, %v395_v60 }
 0x135   :  { %v309_v63 = vadd.f32 %v468_v46, %v397_v62  ;;  %v398_v0 = vpop.f32.mrb[12].mxu0 }
 0x136   :  { %v399_v1 = vpop.f32.mrb[13].mxu0 }
 0x137   :  { %327 = vst [vmem:[#allocation7 + $0x28] sm:$0xff] %v309_v63  ;;  %v400_v2 = vadd.f32 %v399_v1, %v398_v0 }
 0x139   :  { %v314_v3 = vadd.f32 %v400_v2, %v313_v54  ;;  %v401_v4 = vpop.f32.mrb[14].mxu0 }
 0x13a   :  { %v402_v5 = vpop.f32.mrb[15].mxu0 }
 0x13b   :  { %328 = vst [vmem:[#allocation7 + $0x30] sm:$0xff] %v314_v3  ;;  %v403_v6 = vadd.f32 %v402_v5, %v401_v4 }
 0x13d   :  { %v319_v7 = vadd.f32 %v471_v52, %v403_v6 }
 0x13f   :  { %329 = vst [vmem:[#allocation7 + $0x38] sm:$0xff] %v319_v7 }
 0x140   :  { %598 = shalt.err (!%p595_p6)
}
 0x141   :  { %s599_s12 = scalar_lea.hbm %s681_s2, 1024 }
 0x142   :  { %p600_p7 = scmp.ne.s32.totalorder %s681_s2, %s599_s12  ;;  %p603_p8 = scmp.lt.u32.totalorder %s599_s12, %s681_s2 }
 0x144   :  { %p605_p9 = pnand %p603_p8, %p600_p7 }
 0x146   :  { %608 = shalt.err (!%p605_p9)
}
 0x147   :  { %341 = dma.vmem_to_hbm [thread:$0]  %s336_s8, 1024, %s681_s2, [#allocation4], %s619_s0, %s619_s0, %s620_s5  }
 0x148   :  { %613 = dma.done.wait [#allocation4], 1024  }
 0x149   :  { %614 = vsyncadd [#allocation4], 4294966272 }
 0x14a   :  { %345 = vsyncpa [#allocation3], 1 }
 0x14b   :  { %346 = vsyncpa [#allocation6], 1 }
 0x14c   :  { %347 = vsyncpa [#allocation4], 1 }

</bundles_post_ra>
